<compile_context>
chip_gen: v7x
topology: tpu7x:2x2x1
jax: 0.10.0
libtpu: 0.0.40
codegen_flags: <defaults>
</compile_context>

<pallas_src>
import jax
import jax.numpy as jnp
from jax.experimental import pallas as pl
from jax.experimental.pallas import tpu as pltpu


# ----------------------------------------------------------------------------
# Pallas kernel: full Actor_Beta forward, batch-in-lanes (transposed) layout
# ----------------------------------------------------------------------------
def _actor_beta_kernel(
    st_ref,            # (S,  TB)   input tile, batch on lanes
    w1_ref, b1_ref,    # (H,  S),  (H, 1)
    w2_ref, b2_ref,    # (H,  H),  (H, 1)
    wh_ref, bh_ref,    # (2A, H),  (2A, 1)   fused [alpha; beta] head
    out_ref,           # (2A, TB)  rows [:A]=alpha^T, rows [A:2A]=beta^T
):
    x = st_ref[...]                                                    # (S, TB)

    # fc1 + tanh
    h1 = jnp.dot(w1_ref[...], x, preferred_element_type=jnp.float32) + b1_ref[...]
    h1 = jnp.tanh(h1)                                                  # (H, TB)

    # fc2 + tanh
    h2 = jnp.dot(w2_ref[...], h1, preferred_element_type=jnp.float32) + b2_ref[...]
    h2 = jnp.tanh(h2)                                                  # (H, TB)

    # fused alpha/beta head: one matmul, one stable softplus, one dense store
    z = jnp.dot(wh_ref[...], h2, preferred_element_type=jnp.float32) + bh_ref[...]
    sp = jnp.maximum(z, 0.0) + jnp.log1p(jnp.exp(-jnp.abs(z)))
    out_ref[...] = sp + 1.0                                            # (2A, TB)


# ----------------------------------------------------------------------------
# One-time parameter preparation (hoisted out of the forward hot path)
# ----------------------------------------------------------------------------
def prepare_actor_beta_params(params):
    """Convert (in,out)-layout params into the kernel's transposed/fused layout."""
    f32 = jnp.float32
    wht = jnp.concatenate([params["wa"].T, params["wb"].T], axis=0).astype(f32)   # (2A, H)
    bh = jnp.concatenate(
        [params["ba"].reshape(-1, 1), params["bb"].reshape(-1, 1)], axis=0
    ).astype(f32)                                                                  # (2A, 1)
    return {
        "w1t": params["w1"].T.astype(f32),            # (H, S)
        "b1": params["b1"].reshape(-1, 1).astype(f32),  # (H, 1)
        "w2t": params["w2"].T.astype(f32),            # (H, H)
        "b2": params["b2"].reshape(-1, 1).astype(f32),  # (H, 1)
        "wht": wht,
        "bh": bh,
    }


# ----------------------------------------------------------------------------
# Forward wrapper
# ----------------------------------------------------------------------------
def actor_beta_forward(s, kparams, *, tb=2048):
    """Actor_Beta forward pass (batch-in-lanes Pallas TPU kernel).

    `kparams` must come from prepare_actor_beta_params().
    Returns (alpha, beta), each of shape (batch, action_dim).
    NOTE: layout assumes feature dims (state_dim, hidden, 2*action_dim) << 128,
    which holds for this module's typical RL configurations.
    """
    s = s.astype(jnp.float32)
    B, S = s.shape
    H = kparams["w1t"].shape[0]
    out2a = kparams["wht"].shape[0]
    A = out2a // 2

    # ---- batch tile: multiple of 128 lanes; cap so the grid has >=2 steps ---
    LANE = 128
    tb = max(LANE, (tb // LANE) * LANE)
    half = pl.cdiv(pl.cdiv(B, 2), LANE) * LANE      # round_up(ceil(B/2), 128)
    tb = min(tb, max(LANE, half))                   # >=2 grid steps when B > 128
    b_pad = pl.cdiv(B, tb) * tb
    grid = (b_pad // tb,)

    # Pad + transpose once (fused by XLA); batch lands on the 128-lane axis.
    st = jnp.pad(s, ((0, b_pad - B), (0, 0))).T     # (S, b_pad)

    flops = 2 * b_pad * (S * H + H * H + H * out2a)
    transcendentals = b_pad * (2 * H + 2 * out2a)   # tanh + exp/log1p
    bytes_accessed = 4 * (
        b_pad * S + b_pad * out2a
        + H * S + H * H + out2a * H + 2 * H + out2a
    )

    out = pl.pallas_call(
        _actor_beta_kernel,
        out_shape=jax.ShapeDtypeStruct((out2a, b_pad), jnp.float32),
        grid_spec=pltpu.PrefetchScalarGridSpec(
            num_scalar_prefetch=0,
            grid=grid,
            in_specs=[
                # activations: tiled over batch (lanes), pipelined/double-buffered
                pl.BlockSpec((S, tb), lambda i: (0, i)),
                # weights & biases: constant block index -> stay VMEM-resident
                pl.BlockSpec((H, S), lambda i: (0, 0)),
                pl.BlockSpec((H, 1), lambda i: (0, 0)),
                pl.BlockSpec((H, H), lambda i: (0, 0)),
                pl.BlockSpec((H, 1), lambda i: (0, 0)),
                pl.BlockSpec((out2a, H), lambda i: (0, 0)),
                pl.BlockSpec((out2a, 1), lambda i: (0, 0)),
            ],
            out_specs=pl.BlockSpec((out2a, tb), lambda i: (0, i)),
        ),
        compiler_params=pltpu.CompilerParams(
            dimension_semantics=("parallel",),      # megacore sharding on v7x
        ),
        cost_estimate=pl.CostEstimate(
            flops=flops,
            transcendentals=transcendentals,
            bytes_accessed=bytes_accessed,
        ),
    )(st, kparams["w1t"], kparams["b1"], kparams["w2t"], kparams["b2"],
      kparams["wht"], kparams["bh"])

    alpha = out[:A, :B].T          # (B, A)
    beta = out[A:out2a, :B].T      # (B, A)
    return alpha, beta


# ----------------------------------------------------------------------------
# Deterministic parameter init (mirrors orthogonal_init in the PyTorch module)
# ----------------------------------------------------------------------------
def _orthogonal(key, out_dim, in_dim, gain):
    """Equivalent of nn.init.orthogonal_ on a (out_dim, in_dim) weight."""
    rows, cols = out_dim, in_dim
    flat = jax.random.normal(key, (rows, cols), dtype=jnp.float32)
    if rows < cols:
        flat = flat.T
    q, r = jnp.linalg.qr(flat)
    d = jnp.sign(jnp.diag(r))
    q = q * d[None, :]
    if rows < cols:
        q = q.T
    return gain * q  # (out_dim, in_dim)


def init_actor_beta_params(key, state_dim, hidden_width, action_dim):
    k1, k2, k3, k4 = jax.random.split(key, 4)
    # torch Linear weight is (out, in); reference math uses (in, out) -> transpose.
    w1 = _orthogonal(k1, hidden_width, state_dim, gain=1.0).T
    w2 = _orthogonal(k2, hidden_width, hidden_width, gain=1.0).T
    wa = _orthogonal(k3, action_dim, hidden_width, gain=0.01).T
    wb = _orthogonal(k4, action_dim, hidden_width, gain=0.01).T
    return {
        "w1": w1, "b1": jnp.zeros((1, hidden_width), jnp.float32),
        "w2": w2, "b2": jnp.zeros((1, hidden_width), jnp.float32),
        "wa": wa, "ba": jnp.zeros((1, action_dim), jnp.float32),
        "wb": wb, "bb": jnp.zeros((1, action_dim), jnp.float32),
    }


# ----------------------------------------------------------------------------
# Pure-JAX reference for verification
# ----------------------------------------------------------------------------
def actor_beta_ref(s, p):
    h1 = jnp.tanh(s @ p["w1"] + p["b1"])
    h2 = jnp.tanh(h1 @ p["w2"] + p["b2"])
    alpha = jax.nn.softplus(h2 @ p["wa"] + p["ba"]) + 1.0
    beta = jax.nn.softplus(h2 @ p["wb"] + p["bb"]) + 1.0
    return alpha, beta


if __name__ == "__main__":
    state_dim, hidden_width, action_dim = 16, 32, 4

    key = jax.random.PRNGKey(0)
    k_params, k_in1, k_in2 = jax.random.split(key, 3)
    params = init_actor_beta_params(k_params, state_dim, hidden_width, action_dim)
    kparams = prepare_actor_beta_params(params)   # one-time, hoisted out of hot path

    # Test 1: tiny batch (single lane-padded tile)
    batch = 8
    s = jax.random.normal(k_in1, (batch, state_dim), dtype=jnp.float32)
    alpha, beta = actor_beta_forward(s, kparams)
    jax.block_until_ready((alpha, beta))
    alpha_ref, beta_ref = actor_beta_ref(s, params)
    assert alpha.shape == (batch, action_dim) and beta.shape == (batch, action_dim)
    assert jnp.allclose(alpha, alpha_ref, atol=1e-5, rtol=1e-5)
    assert jnp.allclose(beta, beta_ref, atol=1e-5, rtol=1e-5)
    assert bool(jnp.all(alpha > 1.0)) and bool(jnp.all(beta > 1.0))

    # Test 2: non-multiple batch spanning >=2 grid steps (exercises batch
    # padding, pipelined tiles and the "parallel" batch axis)
    batch2 = 300
    s2 = jax.random.normal(k_in2, (batch2, state_dim), dtype=jnp.float32)
    alpha2, beta2 = actor_beta_forward(s2, kparams)
    jax.block_until_ready((alpha2, beta2))
    alpha2_ref, beta2_ref = actor_beta_ref(s2, params)
    assert alpha2.shape == (batch2, action_dim)
    assert jnp.allclose(alpha2, alpha2_ref, atol=1e-5, rtol=1e-5)
    assert jnp.allclose(beta2, beta2_ref, atol=1e-5, rtol=1e-5)
    assert bool(jnp.all(alpha2 > 1.0)) and bool(jnp.all(beta2 > 1.0))

    print("KERNEL_OK")
</pallas_src>

<mosaic_0001>
module attributes {stable_mosaic.version = 11 : i64} {
  func.func @_actor_beta_kernel(%arg0: i32, %arg1: memref<16x128xf32, #tpu.memory_space<vmem>>, %arg2: memref<32x16xf32, #tpu.memory_space<vmem>>, %arg3: memref<32x1xf32, #tpu.memory_space<vmem>>, %arg4: memref<32x32xf32, #tpu.memory_space<vmem>>, %arg5: memref<32x1xf32, #tpu.memory_space<vmem>>, %arg6: memref<8x32xf32, #tpu.memory_space<vmem>>, %arg7: memref<8x1xf32, #tpu.memory_space<vmem>>, %arg8: memref<8x128xf32, #tpu.memory_space<vmem>>) attributes {dimension_semantics = [#tpu.dimension_semantics<parallel>], iteration_bounds = array<i64: 1>, scalar_prefetch = 0 : i64, scratch_operands = 0 : i64, tpu.core_type = #tpu.core_type<tc>, window_params = [{transform_indices = @transform_0, window_bounds = array<i64: 16, 128>}, {pipeline_mode = #tpu.pipeline_mode<synchronous>, transform_indices = @transform_1, window_bounds = array<i64: 32, 16>}, {pipeline_mode = #tpu.pipeline_mode<synchronous>, transform_indices = @transform_2, window_bounds = array<i64: 32, 1>}, {pipeline_mode = #tpu.pipeline_mode<synchronous>, transform_indices = @transform_3, window_bounds = array<i64: 32, 32>}, {pipeline_mode = #tpu.pipeline_mode<synchronous>, transform_indices = @transform_4, window_bounds = array<i64: 32, 1>}, {pipeline_mode = #tpu.pipeline_mode<synchronous>, transform_indices = @transform_5, window_bounds = array<i64: 8, 32>}, {pipeline_mode = #tpu.pipeline_mode<synchronous>, transform_indices = @transform_6, window_bounds = array<i64: 8, 1>}, {transform_indices = @transform_7, window_bounds = array<i64: 8, 128>}]} {
    %c0 = arith.constant 0 : index
    %c0_0 = arith.constant 0 : index
    %0 = vector.load %arg1[%c0, %c0_0] : memref<16x128xf32, #tpu.memory_space<vmem>>, vector<16x128xf32>
    %c0_1 = arith.constant 0 : index
    %c0_2 = arith.constant 0 : index
    %1 = vector.load %arg2[%c0_1, %c0_2] : memref<32x16xf32, #tpu.memory_space<vmem>>, vector<32x16xf32>
    %cst = arith.constant dense<0.000000e+00> : vector<32x128xf32>
    %2 = tpu.matmul %1, %0, %cst {dimension_numbers = #tpu.dot_dimension_numbers<[1], [0], [0], [1], [0, 0, 1, 1], [], []>} : vector<32x16xf32>, vector<16x128xf32>, vector<32x128xf32> -> vector<32x128xf32>
    %c0_3 = arith.constant 0 : index
    %c0_4 = arith.constant 0 : index
    %3 = vector.load %arg3[%c0_3, %c0_4] : memref<32x1xf32, #tpu.memory_space<vmem>>, vector<32x1xf32>
    %4 = vector.broadcast %3 : vector<32x1xf32> to vector<32x128xf32>
    %5 = arith.addf %2, %4 : vector<32x128xf32>
    %6 = math.tanh %5 : vector<32x128xf32>
    %c0_5 = arith.constant 0 : index
    %c0_6 = arith.constant 0 : index
    %7 = vector.load %arg4[%c0_5, %c0_6] : memref<32x32xf32, #tpu.memory_space<vmem>>, vector<32x32xf32>
    %cst_7 = arith.constant dense<0.000000e+00> : vector<32x128xf32>
    %8 = tpu.matmul %7, %6, %cst_7 {dimension_numbers = #tpu.dot_dimension_numbers<[1], [0], [0], [1], [0, 0, 1, 1], [], []>} : vector<32x32xf32>, vector<32x128xf32>, vector<32x128xf32> -> vector<32x128xf32>
    %c0_8 = arith.constant 0 : index
    %c0_9 = arith.constant 0 : index
    %9 = vector.load %arg5[%c0_8, %c0_9] : memref<32x1xf32, #tpu.memory_space<vmem>>, vector<32x1xf32>
    %10 = vector.broadcast %9 : vector<32x1xf32> to vector<32x128xf32>
    %11 = arith.addf %8, %10 : vector<32x128xf32>
    %12 = math.tanh %11 : vector<32x128xf32>
    %c0_10 = arith.constant 0 : index
    %c0_11 = arith.constant 0 : index
    %13 = vector.load %arg6[%c0_10, %c0_11] : memref<8x32xf32, #tpu.memory_space<vmem>>, vector<8x32xf32>
    %cst_12 = arith.constant dense<0.000000e+00> : vector<8x128xf32>
    %14 = tpu.matmul %13, %12, %cst_12 {dimension_numbers = #tpu.dot_dimension_numbers<[1], [0], [0], [1], [0, 0, 1, 1], [], []>} : vector<8x32xf32>, vector<32x128xf32>, vector<8x128xf32> -> vector<8x128xf32>
    %c0_13 = arith.constant 0 : index
    %c0_14 = arith.constant 0 : index
    %15 = vector.load %arg7[%c0_13, %c0_14] : memref<8x1xf32, #tpu.memory_space<vmem>>, vector<8x1xf32>
    %16 = vector.broadcast %15 : vector<8x1xf32> to vector<8x128xf32>
    %17 = arith.addf %14, %16 : vector<8x128xf32>
    %cst_15 = arith.constant 0.000000e+00 : f32
    %18 = vector.broadcast %cst_15 : f32 to vector<8x128xf32>
    %19 = arith.maximumf %17, %18 : vector<8x128xf32>
    %20 = math.absf %17 : vector<8x128xf32>
    %cst_16 = arith.constant 0.000000e+00 : f32
    %21 = vector.broadcast %cst_16 : f32 to vector<8x128xf32>
    %22 = arith.subf %21, %20 : vector<8x128xf32>
    %23 = math.exp %22 : vector<8x128xf32>
    %24 = math.log1p %23 : vector<8x128xf32>
    %25 = arith.addf %19, %24 : vector<8x128xf32>
    %cst_17 = arith.constant 1.000000e+00 : f32
    %26 = vector.broadcast %cst_17 : f32 to vector<8x128xf32>
    %27 = arith.addf %25, %26 : vector<8x128xf32>
    %c0_18 = arith.constant 0 : index
    %c0_19 = arith.constant 0 : index
    %28 = vector.load %arg8[%c0_18, %c0_19] : memref<8x128xf32, #tpu.memory_space<vmem>>, vector<8x128xf32>
    tpu.vector_store %arg8[%c0_18, %c0_19], %27 {strides = array<i32>} : memref<8x128xf32, #tpu.memory_space<vmem>>, vector<8x128xf32>,
    return
  }
  func.func @transform_0(%arg0: i32) -> (i32, i32) {
    %c0_i32 = arith.constant 0 : i32
    %c0_i32_0 = arith.constant 0 : i32
    return %c0_i32, %arg0 : i32, i32
  }
  func.func @transform_1(%arg0: i32) -> (i32, i32) {
    %c0_i32 = arith.constant 0 : i32
    %c0_i32_0 = arith.constant 0 : i32
    %c0_i32_1 = arith.constant 0 : i32
    return %c0_i32, %c0_i32_0 : i32, i32
  }
  func.func @transform_2(%arg0: i32) -> (i32, i32) {
    %c0_i32 = arith.constant 0 : i32
    %c0_i32_0 = arith.constant 0 : i32
    %c0_i32_1 = arith.constant 0 : i32
    return %c0_i32, %c0_i32_0 : i32, i32
  }
  func.func @transform_3(%arg0: i32) -> (i32, i32) {
    %c0_i32 = arith.constant 0 : i32
    %c0_i32_0 = arith.constant 0 : i32
    %c0_i32_1 = arith.constant 0 : i32
    return %c0_i32, %c0_i32_0 : i32, i32
  }
  func.func @transform_4(%arg0: i32) -> (i32, i32) {
    %c0_i32 = arith.constant 0 : i32
    %c0_i32_0 = arith.constant 0 : i32
    %c0_i32_1 = arith.constant 0 : i32
    return %c0_i32, %c0_i32_0 : i32, i32
  }
  func.func @transform_5(%arg0: i32) -> (i32, i32) {
    %c0_i32 = arith.constant 0 : i32
    %c0_i32_0 = arith.constant 0 : i32
    %c0_i32_1 = arith.constant 0 : i32
    return %c0_i32, %c0_i32_0 : i32, i32
  }
  func.func @transform_6(%arg0: i32) -> (i32, i32) {
    %c0_i32 = arith.constant 0 : i32
    %c0_i32_0 = arith.constant 0 : i32
    %c0_i32_1 = arith.constant 0 : i32
    return %c0_i32, %c0_i32_0 : i32, i32
  }
  func.func @transform_7(%arg0: i32) -> (i32, i32) {
    %c0_i32 = arith.constant 0 : i32
    %c0_i32_0 = arith.constant 0 : i32
    return %c0_i32, %arg0 : i32, i32
  }
}

</mosaic_0001>

<bundles_post_ra>
// kernel: tpu_custom_call.1
= control target key start
LH: loop header
LB: loop body
LE: loop exit
PB: predicated region body
PF: predicated region fallthrough
CT: control target
= control target key end

     0   :  { %vm57_vm0 = vcmask 130048   ;;  %v532_v4 = vmov 0   ;;  %s658_s0 = inlined_call_operand.vmem [shape: f32[16,128], index: 0, kind: input, shape index: {}]   ;;  %s659_s1 = inlined_call_operand.vmem [shape: f32[32,16], index: 1, kind: input, shape index: {}]   ;;  %s660_s2 = inlined_call_operand.vmem [shape: f32[32,1], index: 2, kind: input, shape index: {}]   ;;  %s661_s3 = inlined_call_operand.vmem [shape: f32[32,32], index: 3, kind: input, shape index: {}]   ;;  %s662_s4 = inlined_call_operand.vmem [shape: f32[32,1], index: 4, kind: input, shape index: {}]   ;;  %s663_s5 = inlined_call_operand.vmem [shape: f32[8,32], index: 5, kind: input, shape index: {}]   ;;  %s664_s6 = inlined_call_operand.vmem [shape: f32[8,1], index: 6, kind: input, shape index: {}]   ;;  %s665_s7 = inlined_call_operand.hbm [shape: f32[8,128], index: 7, kind: output, shape index: {}]  }
   0x1   :  { %v27_v0 = vld [vmem:[%s658_s0] sm:$0xff]  ;;  %v28_v1 = vld [vmem:[%s658_s0 + $0x8] sm:$0xff]  ;;  %486 = vset.pattern.permute.xlu0 %v532_v4  ;;  %487 = vset.pattern.permute.xlu1 %v532_v4  ;;  %v35_v6 = vld [vmem:[%s660_s2 + $0x10] sm:$0xff] }
   0x2   :  { %v29_v2 = vld [vmem:[%s659_s1] sm:$0xff]  ;;  %v463_v3 = vpack.c.bf16 %v28_v1, %v27_v0  ;;  %v30_v7 = vld [vmem:[%s659_s1 + $0x8] sm:$0xff]  ;;  %49 = vperm.xlu1 %487, %v35_v6   ;;  %v31_v9 = vld [vmem:[%s659_s1 + $0x10] sm:$0xff] }
   0x3   :  { %432 = vmatprep.mubr.msk.f32.mxu0 %vm57_vm0, %v29_v2  ;;  %v33_v5 = vld [vmem:[%s660_s2] sm:$0xff]  ;;  %v34_v8 = vld [vmem:[%s660_s2 + $0x8] sm:$0xff]  ;;  %v36_v10 = vld [vmem:[%s660_s2 + $0x18] sm:$0xff] }
   0x4   :  { %464 = vmatprep.subr.bf16.mxu0 %v463_v3  ;;  %39 = vperm.xlu0 %486, %v33_v5  }
   0x5   :  { %466 = vmatpush3.bf16.msra.mxu0 %v463_v3 }
   0x6   :  { %12 = vsyncpa [#allocation3], 0  ;;  %v32_v11 = vld [vmem:[%s659_s1 + $0x18] sm:$0xff]  ;;  %v163_v12 = vld [vmem:[%s662_s4] sm:$0xff]  ;;  %54 = vperm.xlu1 %487, %v36_v10   ;;  %vm187_vm1 = vcmask 261120   ;;  %v533_v39 = vmov 0.0|0.0  }
   0x7   :  { %v164_v13 = vld [vmem:[%s662_s4 + $0x8] sm:$0xff]  ;;  %v165_v14 = vld [vmem:[%s662_s4 + $0x10] sm:$0xff]  ;;  %v166_v15 = vld [vmem:[%s662_s4 + $0x18] sm:$0xff]  ;;  %475 = vmatprep.subr.bf16.mxu0 %v533_v39  ;;  %vm534_vm2 = vmmov 0   ;;  %v535_v40 = vmov 0.0  }
   0x8   :  { %433 = vmatmul.mubr.msk.f32.vlgmr.msra.gmra.mrb[0].mxu0 %vm57_vm0, %v30_v7  ;;  %44 = vperm.xlu0 %486, %v34_v8   ;;  %v290_v16 = vld [vmem:[%s664_s6] sm:$0xff]  ;;  %v160_v36 = vld [vmem:[%s661_s3 + $0x8] sm:$0xff]  ;;  %v161_v37 = vld [vmem:[%s661_s3 + $0x10] sm:$0xff] }
   0x9   :  { %435 = vmatprep.mubr.msk.f32.mxu0 %vm57_vm0, %v31_v9  ;;  %v159_v17 = vld [vmem:[%s661_s3] sm:$0xff]  ;;  %v162_v38 = vld [vmem:[%s661_s3 + $0x18] sm:$0xff] }
   0xa   :  { %174 = vperm.xlu1 %487, %v164_v13   ;;  %446 = vmatprep.mubr.msk.f32.mxu1 %vm187_vm1, %v159_v17  ;;  %v289_v59 = vld [vmem:[%s663_s5] sm:$0xff]  ;;  %s536_s5 = smov [#allocation2]  }
   0xb   :  { %s392_s11 = sshll.u32 %s536_s5, 4  ;;  %s393_s11 = int_to_ptr.vmem [resolvable:$true] %s392_s11 }
   0xc   :  { %436 = vmatmul.mubr.msk.f32.gmra.mrb[2].mxu0 %vm57_vm0, %v32_v11  ;;  %169 = vperm.xlu0 %486, %v163_v12   ;;  %s508_s12 = scalar_lea.vmem %s393_s11, 128  ;;  %p513_p1 = scmp.lt.s32.totalorder %s393_s11, %s393_s11 }
   0xd   :  { %460 = vmatprep.mubr.msk.f32.mxu0 %vm534_vm2, %v535_v40  ;;  %p509_p0 = scmp.ne.s32.totalorder %s393_s11, %s508_s12  ;;  %p514_p2 = scmp.lt.s32.totalorder %s508_s12, %s508_s12 }
   0xe   :  { %184 = vperm.xlu1 %487, %v166_v15  }
   0xf   :  { %p515_p3 = por %p514_p2, %p513_p1 }
  0x10   :  { %179 = vperm.xlu0 %486, %v165_v14  }
  0x11   :  { %p516_p4 = pnand %p515_p3, %p509_p0 }
  0x14   :  { %293 = vperm.xlu0 %486, %v290_v16  }
  0x81   :  { %v50_v19 = vpop.permute.xlu1 %49 }
  0x83   :  { %v40_v18 = vpop.permute.xlu0 %39 }
  0x85   :  { %v55_v25 = vpop.permute.xlu1 %54 }
  0x87   :  { %v45_v20 = vpop.permute.xlu0 %44 }
  0x89   :  { %v175_v41 = vpop.permute.xlu1 %174 }
  0x8b   :  { %v170_v42 = vpop.permute.xlu0 %169 }
  0x8d   :  { %v185_v47 = vpop.permute.xlu1 %184 }
  0x8f   :  { %v180_v49 = vpop.permute.xlu0 %179 }
  0x93   :  { %v294_v60 = vpop.permute.xlu0 %293 }
  0xdb   :  { %v434_v21 = vpop.f32.mrb[0].mxu0 }
  0xdc   :  { %v142_v22 = vadd.f32 %v434_v21, %v45_v20  ;;  %v136_v23 = vpop.f32.mrb[1].mxu0 }
  0xdd   :  { %v137_v24 = vadd.f32 %v136_v23, %v40_v18 }
  0xde   :  { %488 = vtanh.f32 %v142_v22 }
  0xdf   :  { %490 = vtanh.f32 %v137_v24  ;;  %v437_v26 = vpop.f32.mrb[2].mxu0 }
  0xe0   :  { %v152_v27 = vadd.f32 %v437_v26, %v55_v25  ;;  %v146_v28 = vpop.f32.mrb[3].mxu0 }
  0xe1   :  { %v147_v29 = vadd.f32 %v146_v28, %v50_v19 }
  0xe2   :  { %492 = vtanh.f32 %v152_v27 }
  0xe3   :  { %494 = vtanh.f32 %v147_v29 }
  0xe8   :  { %v489_v30 = vpop.eup %488 }
  0xe9   :  { %v491_v31 = vpop.eup %490 }
  0xea   :  { %v467_v32 = vpack.c.bf16 %v489_v30, %v491_v31 }
  0xec   :  { %v493_v33 = vpop.eup %492  ;;  %468 = vmatprep.subr.bf16.mxu1 %v467_v32 }
  0xed   :  { %v495_v34 = vpop.eup %494  ;;  %470 = vmatpush3.bf16.msra.mxu1 %v467_v32 }
  0xee   :  { %v471_v35 = vpack.c.bf16 %v493_v33, %v495_v34 }
  0xf0   :  { %472 = vmatprep.subr.bf16.mxu1 %v471_v35 }
  0xf1   :  { %474 = vmatpush3.bf16.msra.mxu1 %v471_v35 }
  0xf4   :  { %447 = vmatmul.mubr.msk.f32.vlgmr.msra.gmra.mrb[0].mxu1 %vm187_vm1, %v160_v36 }
  0xf5   :  { %449 = vmatprep.mubr.msk.f32.mxu1 %vm187_vm1, %v161_v37 }
  0xf8   :  { %450 = vmatmul.mubr.msk.f32.gmra.mrb[2].mxu1 %vm187_vm1, %v162_v38 }
 0x1c7   :  { %v448_v43 = vpop.f32.mrb[0].mxu1 }
 0x1c8   :  { %v272_v44 = vadd.f32 %v448_v43, %v175_v41  ;;  %v266_v45 = vpop.f32.mrb[1].mxu1 }
 0x1c9   :  { %v267_v46 = vadd.f32 %v266_v45, %v170_v42 }
 0x1ca   :  { %496 = vtanh.f32 %v272_v44 }
 0x1cb   :  { %498 = vtanh.f32 %v267_v46  ;;  %v451_v48 = vpop.f32.mrb[2].mxu1 }
 0x1cc   :  { %v282_v50 = vadd.f32 %v451_v48, %v185_v47  ;;  %v276_v51 = vpop.f32.mrb[3].mxu1 }
 0x1cd   :  { %v277_v52 = vadd.f32 %v276_v51, %v180_v49 }
 0x1ce   :  { %500 = vtanh.f32 %v282_v50 }
 0x1cf   :  { %502 = vtanh.f32 %v277_v52 }
 0x1d4   :  { %v497_v53 = vpop.eup %496 }
 0x1d5   :  { %v499_v54 = vpop.eup %498 }
 0x1d6   :  { %v476_v55 = vpack.c.bf16 %v497_v53, %v499_v54 }
 0x1d8   :  { %v501_v56 = vpop.eup %500  ;;  %477 = vmatpush3.bf16.msra.mxu0 %v476_v55 }
 0x1d9   :  { %v503_v57 = vpop.eup %502  ;;  %478 = vmatprep.subr.bf16.mxu0 %v533_v39 }
 0x1da   :  { %v479_v58 = vpack.c.bf16 %v501_v56, %v503_v57 }
 0x1dc   :  { %480 = vmatpush3.bf16.msra.mxu0 %v479_v58 }
 0x1df   :  { %461 = vmatmul.mubr.msk.f32.vlgmr.msra.gmra.mrb[4].mxu0 %vm187_vm1, %v289_v59 }
 0x2b2   :  { %v365_v61 = vpop.f32.mrb[4].mxu0 }
 0x2b3   :  { %v366_v62 = vadd.f32 %v365_v61, %v294_v60  ;;  %v462_v63 = vpop.f32.mrb[5].mxu0 }
 0x2b5   :  { %v370_v0 = vand.u32 2147483647, %v366_v62  ;;  %v369_v11 = vmax.f32 %v366_v62, 0.0 }
 0x2b7   :  { %v371_v1 = vsub.f32 0.0, %v370_v0 }
 0x2b9   :  { %v372_v2 = vmul.f32 1.442695, %v371_v1 }
 0x2bb   :  { %504 = vpow2.f32 %v372_v2 }
 0x2c5   :  { %v505_v3 = vpop.eup %504 }
 0x2c6   :  { %v374_v4 = vadd.f32 1.0, %v505_v3  ;;  %v377_v5 = vmul.f32 -0.5, %v505_v3  ;;  %v380_v7 = vand.u32 2147483647, %v505_v3 }
 0x2c8   :  { %506 = vlog2.f32 %v374_v4  ;;  %v378_v6 = vadd.f32 1.0, %v377_v5  ;;  %vm381_vm3 = vcmp.lt.f32.partialorder %v380_v7, 0.0004427343 }
 0x2ca   :  { %v379_v10 = vmul.f32 %v505_v3, %v378_v6 }
 0x2d2   :  { %v507_v8 = vpop.eup %506 }
 0x2d3   :  { %v376_v9 = vmul.f32 0.6931472, %v507_v8 }
 0x2d5   :  { %v382_v12 = vsel %vm381_vm3, %v379_v10, %v376_v9 }
 0x2d6   :  { %v383_v13 = vadd.f32 %v382_v12, %v369_v11 }
 0x2d8   :  { %v384_v14 = vadd.f32 1.0, %v383_v13 }
 0x2da   :  { %385 = vst [vmem:[#allocation2] sm:$0xff] %v384_v14 }
 0x2db   :  { %519 = shalt.err (!%p516_p4)
}
 0x2dc   :  { %s520_s15 = scalar_lea.hbm %s665_s7, 128 }
 0x2dd   :  { %p521_p5 = scmp.ne.s32.totalorder %s665_s7, %s520_s15  ;;  %p524_p6 = scmp.lt.u32.totalorder %s520_s15, %s665_s7 }
 0x2df   :  { %p526_p7 = pnand %p524_p6, %p521_p5 }
 0x2e1   :  { %529 = shalt.err (!%p526_p7)
}
 0x2e2   :  { %395 = dma.vmem_to_hbm [thread:$0]  %s393_s11, 128, %s665_s7, [#allocation3]  }
 0x2e3   :  { %530 = dma.done.wait [#allocation3], 128  }
 0x2e4   :  { %531 = vsyncadd [#allocation3], 4294967168 }
 0x2e5   :  { %399 = vsyncpa [#allocation3], 1 }

</bundles_post_ra>
